<compile_context>
chip_gen: v5e
topology: v5e:2x2
jax: 0.10.0
libtpu: 0.0.40
codegen_flags: <defaults>
</compile_context>

<pallas_src>
import functools

import jax
import jax.numpy as jnp
from jax.experimental import pallas as pl
from jax.experimental.pallas import tpu as pltpu

INPUT_DIM = 28 * 28   # 784 (K)
LANE = 128            # class dim padded to one full lane group -> unmasked stores
DEFAULT_TB = 2048     # batch tile (rows); ~15 MiB double-buffered with f32 x


def _round_up(x, m):
    return ((x + m - 1) // m) * m


def _logreg_kernel(x_ref, w_ref, b_ref, o_ref):
    # x_ref: (TB, 784) f32   w_ref: (784, 128) bf16
    # b_ref: (1, 128)  f32   o_ref: (TB, 128)  f32
    x = x_ref[...].astype(jnp.bfloat16)          # in-kernel cast: hidden under DMA
    acc = jnp.dot(x, w_ref[...], preferred_element_type=jnp.float32)
    acc = acc + b_ref[...]                        # broadcast bias over rows (f32)
    o_ref[...] = jax.nn.sigmoid(acc)              # exp/recip hit the EUP slot


def prepare_params(weight, bias, compute_dtype=jnp.bfloat16):
    """One-time param prep: weight (N, 784) -> (784, 128) transposed + lane-padded,
    bias (N,) -> (1, 128) padded.  Keeps the transpose/cast out of the hot path."""
    n = weight.shape[0]
    w_km = jnp.zeros((INPUT_DIM, LANE), compute_dtype)
    w_km = w_km.at[:, :n].set(weight.T.astype(compute_dtype))
    b_2d = jnp.zeros((1, LANE), jnp.float32)
    b_2d = b_2d.at[:, :n].set(bias.astype(jnp.float32))
    return w_km, b_2d


@functools.partial(jax.jit, static_argnames=("num_classes", "block_b"))
def logistic_regression_forward(x, w_km, b_2d, *, num_classes, block_b=DEFAULT_TB):
    """x: (B, 1, 28, 28) or (B, 784) f32; w_km: (784, 128) bf16; b_2d: (1, 128) f32."""
    x2d = x.reshape(-1, INPUT_DIM)                 # x.view(-1, 28*28); stays f32
    B = x2d.shape[0]

    # Batch tile: multiple of 8 sublanes; cap at ceil(B/2) for large B so the
    # "parallel" grid axis has >= 2 steps (both TensorCores on v7x).
    tb = min(block_b, _round_up(B, 8))
    if B >= 16:
        tb = min(tb, _round_up(-(-B // 2), 8))

    grid = (pl.cdiv(B, tb),)                       # partial last block is masked

    out = pl.pallas_call(
        _logreg_kernel,
        out_shape=jax.ShapeDtypeStruct((B, LANE), jnp.float32),
        grid_spec=pl.GridSpec(
            grid=grid,
            in_specs=[
                pl.BlockSpec((tb, INPUT_DIM), lambda i: (i, 0)),    # streamed per tile
                pl.BlockSpec((INPUT_DIM, LANE), lambda i: (0, 0)),   # VMEM-resident W
                pl.BlockSpec((1, LANE), lambda i: (0, 0)),           # VMEM-resident bias
            ],
            out_specs=pl.BlockSpec((tb, LANE), lambda i: (i, 0)),
        ),
        compiler_params=pltpu.CompilerParams(
            dimension_semantics=("parallel",),        # megacore-shard batch on v7x
            vmem_limit_bytes=48 * 1024 * 1024,        # room for f32-x tiles; <64 MiB (v7x)
        ),
    )(x2d, w_km, b_2d)

    # Only the lane (class) padding remains to strip; XLA fuses this slice into
    # the consumer under jit.  Padded columns hold sigmoid(0) = 0.5 and are dropped.
    return out[:, :num_classes]


def init_params(key, input_dim, output_dim):
    # Matches torch.nn.Linear default init: U(-1/sqrt(fan_in), 1/sqrt(fan_in))
    kw, kb = jax.random.split(key)
    bound = 1.0 / jnp.sqrt(jnp.float32(input_dim))
    weight = jax.random.uniform(kw, (output_dim, input_dim), jnp.float32,
                                minval=-bound, maxval=bound)
    bias = jax.random.uniform(kb, (output_dim,), jnp.float32,
                              minval=-bound, maxval=bound)
    return weight, bias


if __name__ == "__main__":
    key = jax.random.PRNGKey(0)
    k_x, k_p = jax.random.split(key)

    batch = 10            # not a multiple of the tile -> exercises the masked tail
    num_classes = 10

    # Synthetic MNIST-shaped input, NCHW.
    x = jax.random.normal(k_x, (batch, 1, 28, 28), dtype=jnp.float32)
    weight, bias = init_params(k_p, INPUT_DIM, num_classes)

    w_km, b_2d = prepare_params(weight, bias)
    out = logistic_regression_forward(x, w_km, b_2d, num_classes=num_classes)
    out = jax.block_until_ready(out)

    # Reference with the same bf16 rounding the kernel applies (f32 accumulate).
    x2d = x.reshape(-1, INPUT_DIM)
    ref_bf16 = jax.nn.sigmoid(
        x2d.astype(jnp.bfloat16).astype(jnp.float32)
        @ weight.T.astype(jnp.bfloat16).astype(jnp.float32) + bias)
    # Full-precision torch-equivalent reference (loose tolerance for bf16 compute).
    ref_f32 = jax.nn.sigmoid(x2d @ weight.T + bias)

    assert out.shape == (batch, num_classes)
    assert jnp.allclose(out, ref_bf16, atol=1e-3, rtol=1e-3)
    assert jnp.allclose(out, ref_f32, atol=2e-2, rtol=2e-2)

    print("KERNEL_OK")
</pallas_src>

<mosaic_0001>
module attributes {stable_mosaic.version = 11 : i64} {
  func.func @_logreg_kernel(%arg0: i32, %arg1: memref<16x784xf32, #tpu.memory_space<vmem>>, %arg2: memref<784x128xbf16, #tpu.memory_space<vmem>>, %arg3: memref<1x128xf32, #tpu.memory_space<vmem>>, %arg4: memref<16x128xf32, #tpu.memory_space<vmem>>) attributes {dimension_semantics = [#tpu.dimension_semantics<parallel>], iteration_bounds = array<i64: 1>, scalar_prefetch = 0 : i64, scratch_operands = 0 : i64, tpu.core_type = #tpu.core_type<tc>, window_params = [{transform_indices = @transform_0, window_bounds = array<i64: 16, 784>}, {pipeline_mode = #tpu.pipeline_mode<synchronous>, transform_indices = @transform_1, window_bounds = array<i64: 784, 128>}, {pipeline_mode = #tpu.pipeline_mode<synchronous>, transform_indices = @transform_2, window_bounds = array<i64: 1, 128>}, {transform_indices = @transform_3, window_bounds = array<i64: 16, 128>}]} {
    %c0 = arith.constant 0 : index
    %c0_0 = arith.constant 0 : index
    %0 = vector.load %arg1[%c0, %c0_0] : memref<16x784xf32, #tpu.memory_space<vmem>>, vector<16x784xf32>
    %1 = arith.truncf %0 : vector<16x784xf32> to vector<16x784xbf16>
    %c0_1 = arith.constant 0 : index
    %c0_2 = arith.constant 0 : index
    %2 = vector.load %arg2[%c0_1, %c0_2] : memref<784x128xbf16, #tpu.memory_space<vmem>>, vector<784x128xbf16>
    %cst = arith.constant dense<0.000000e+00> : vector<16x128xf32>
    %3 = tpu.matmul %1, %2, %cst {dimension_numbers = #tpu.dot_dimension_numbers<[1], [0], [0], [1], [0, 0, 1, 1], [], []>} : vector<16x784xbf16>, vector<784x128xbf16>, vector<16x128xf32> -> vector<16x128xf32>
    %c0_3 = arith.constant 0 : index
    %c0_4 = arith.constant 0 : index
    %4 = vector.load %arg3[%c0_3, %c0_4] : memref<1x128xf32, #tpu.memory_space<vmem>>, vector<1x128xf32>
    %5 = vector.broadcast %4 : vector<1x128xf32> to vector<16x128xf32>
    %6 = arith.addf %3, %5 : vector<16x128xf32>
    %7 = arith.negf %6 : vector<16x128xf32>
    %8 = math.exp %7 : vector<16x128xf32>
    %cst_5 = arith.constant 1.000000e+00 : f32
    %9 = vector.broadcast %cst_5 : f32 to vector<16x128xf32>
    %10 = arith.addf %9, %8 : vector<16x128xf32>
    %11 = arith.divf %9, %10 : vector<16x128xf32>
    %c0_6 = arith.constant 0 : index
    %c0_7 = arith.constant 0 : index
    %12 = vector.load %arg4[%c0_6, %c0_7] : memref<16x128xf32, #tpu.memory_space<vmem>>, vector<16x128xf32>
    tpu.vector_store %arg4[%c0_6, %c0_7], %11 {strides = array<i32>} : memref<16x128xf32, #tpu.memory_space<vmem>>, vector<16x128xf32>,
    return
  }
  func.func @transform_0(%arg0: i32) -> (i32, i32) {
    %c0_i32 = arith.constant 0 : i32
    %c0_i32_0 = arith.constant 0 : i32
    return %arg0, %c0_i32 : i32, i32
  }
  func.func @transform_1(%arg0: i32) -> (i32, i32) {
    %c0_i32 = arith.constant 0 : i32
    %c0_i32_0 = arith.constant 0 : i32
    %c0_i32_1 = arith.constant 0 : i32
    return %c0_i32, %c0_i32_0 : i32, i32
  }
  func.func @transform_2(%arg0: i32) -> (i32, i32) {
    %c0_i32 = arith.constant 0 : i32
    %c0_i32_0 = arith.constant 0 : i32
    %c0_i32_1 = arith.constant 0 : i32
    return %c0_i32, %c0_i32_0 : i32, i32
  }
  func.func @transform_3(%arg0: i32) -> (i32, i32) {
    %c0_i32 = arith.constant 0 : i32
    %c0_i32_0 = arith.constant 0 : i32
    return %arg0, %c0_i32 : i32, i32
  }
}

</mosaic_0001>

<bundles_post_ra>
// kernel: logistic_regression_forward.1
= control target key start
LH: loop header
LB: loop body
LE: loop exit
PB: predicated region body
PF: predicated region fallthrough
CT: control target
= control target key end

     0   :  { %s1097_s0 = inlined_call_operand.vmem [shape: f32[10,784], index: 0, kind: input, shape index: {}]   ;;  %s1098_s1 = inlined_call_operand.vmem [shape: bf16[784,128], index: 1, kind: input, shape index: {}]   ;;  %s1099_s2 = inlined_call_operand.vmem [shape: f32[1,128], index: 2, kind: input, shape index: {}]   ;;  %s1100_s3 = inlined_call_operand.hbm [shape: f32[10,128], index: 3, kind: output, shape index: {}]  }
   0x1   :  { %v799_v0 = vld [vmem:[%s1098_s1 + $0x38] sm:$0xff]  ;;  %v798_v4 = vld [vmem:[%s1098_s1 + $0x30] sm:$0xff]  ;;  %v797_v8 = vld [vmem:[%s1098_s1 + $0x28] sm:$0xff] }
   0x2   :  { %v807_v1 = vld [vmem:[%s1098_s1 + $0x78] sm:$0xff]  ;;  %437 = vmatpush.bf16.msra.mxu0 %v799_v0  ;;  %v806_v5 = vld [vmem:[%s1098_s1 + $0x70] sm:$0xff]  ;;  %v805_v9 = vld [vmem:[%s1098_s1 + $0x68] sm:$0xff] }
   0x3   :  { %v815_v2 = vld [vmem:[%s1098_s1 + $0xb8] sm:$0xff]  ;;  %451 = vmatpush.bf16.msra.mxu1 %v807_v1  ;;  %v814_v6 = vld [vmem:[%s1098_s1 + $0xb0] sm:$0xff]  ;;  %v813_v10 = vld [vmem:[%s1098_s1 + $0xa8] sm:$0xff] }
   0x4   :  { %v823_v3 = vld [vmem:[%s1098_s1 + $0xf8] sm:$0xff]  ;;  %465 = vmatpush.bf16.msra.mxu2 %v815_v2  ;;  %v822_v7 = vld [vmem:[%s1098_s1 + $0xf0] sm:$0xff]  ;;  %v821_v11 = vld [vmem:[%s1098_s1 + $0xe8] sm:$0xff] }
   0x5   :  { %479 = vmatpush.bf16.msra.mxu3 %v823_v3  ;;  %v796_v12 = vld [vmem:[%s1098_s1 + $0x20] sm:$0xff]  ;;  %v795_v16 = vld [vmem:[%s1098_s1 + $0x18] sm:$0xff]  ;;  %v794_v20 = vld [vmem:[%s1098_s1 + $0x10] sm:$0xff] }
   0x6   :  { %438 = vmatpush.bf16.msra.mxu0 %v798_v4  ;;  %v804_v13 = vld [vmem:[%s1098_s1 + $0x60] sm:$0xff]  ;;  %v803_v17 = vld [vmem:[%s1098_s1 + $0x58] sm:$0xff]  ;;  %v802_v21 = vld [vmem:[%s1098_s1 + $0x50] sm:$0xff] }
   0x7   :  { %452 = vmatpush.bf16.msra.mxu1 %v806_v5  ;;  %v812_v14 = vld [vmem:[%s1098_s1 + $0xa0] sm:$0xff]  ;;  %v811_v18 = vld [vmem:[%s1098_s1 + $0x98] sm:$0xff] }
   0x8   :  { %466 = vmatpush.bf16.msra.mxu2 %v814_v6  ;;  %v820_v15 = vld [vmem:[%s1098_s1 + $0xe0] sm:$0xff]  ;;  %v819_v19 = vld [vmem:[%s1098_s1 + $0xd8] sm:$0xff] }
   0x9   :  { %480 = vmatpush.bf16.msra.mxu3 %v822_v7 }
   0xa   :  { %439 = vmatpush.bf16.msra.mxu0 %v797_v8 }
   0xb   :  { %453 = vmatpush.bf16.msra.mxu1 %v805_v9 }
   0xc   :  { %467 = vmatpush.bf16.msra.mxu2 %v813_v10 }
   0xd   :  { %481 = vmatpush.bf16.msra.mxu3 %v821_v11 }
   0xe   :  { %440 = vmatpush.bf16.msra.mxu0 %v796_v12 }
   0xf   :  { %454 = vmatpush.bf16.msra.mxu1 %v804_v13 }
  0x10   :  { %468 = vmatpush.bf16.msra.mxu2 %v812_v14 }
  0x11   :  { %482 = vmatpush.bf16.msra.mxu3 %v820_v15 }
  0x12   :  { %441 = vmatpush.bf16.msra.mxu0 %v795_v16 }
  0x13   :  { %455 = vmatpush.bf16.msra.mxu1 %v803_v17 }
  0x14   :  { %8 = vsyncpa [#allocation3], 0  ;;  %469 = vmatpush.bf16.msra.mxu2 %v811_v18  ;;  %v810_v22 = vld [vmem:[%s1098_s1 + $0x90] sm:$0xff]  ;;  %v793_v24 = vld [vmem:[%s1098_s1 + $0x8] sm:$0xff]  ;;  %vm433_vm0 = vcmask 130048   ;;  %s581_s6 = sshll.u32 %s1100_s3, 4  ;;  %s582_s6 = int_to_ptr.hbm [resolvable:$true] %s581_s6 }
  0x15   :  { %483 = vmatpush.bf16.msra.mxu3 %v819_v19  ;;  %v818_v23 = vld [vmem:[%s1098_s1 + $0xd0] sm:$0xff]  ;;  %v801_v25 = vld [vmem:[%s1098_s1 + $0x48] sm:$0xff]  ;;  %v792_v28 = vld [vmem:[%s1098_s1] sm:$0xff]  ;;  %s880_s7 = smov 128   ;;  %s881_s8 = smov 8  }
  0x16   :  { %442 = vmatpush.bf16.msra.mxu0 %v794_v20  ;;  %v809_v26 = vld [vmem:[%s1098_s1 + $0x88] sm:$0xff]  ;;  %v800_v29 = vld [vmem:[%s1098_s1 + $0x40] sm:$0xff]  ;;  %v23_v31 = vld [vmem:[%s1097_s0 + $0x38] sm:$0xff] }
  0x17   :  { %456 = vmatpush.bf16.msra.mxu1 %v802_v21  ;;  %v817_v27 = vld [vmem:[%s1098_s1 + $0xc8] sm:$0xff]  ;;  %v16_v30 = vld [vmem:[%s1097_s0] sm:$0xff]  ;;  %v831_v34 = vld [vmem:[%s1098_s1 + $0x138] sm:$0xff] }
  0x18   :  { %470 = vmatpush.bf16.msra.mxu2 %v810_v22  ;;  %v17_v32 = vld [vmem:[%s1097_s0 + $0x8] sm:$0xff]  ;;  %v24_v33 = vld [vmem:[%s1097_s0 + $0x40] sm:$0xff]  ;;  %v839_v35 = vld [vmem:[%s1098_s1 + $0x178] sm:$0xff]  ;;  %v30_v40 = vpack.c.bf16 %v23_v31, %v16_v30 }
  0x19   :  { %484 = vmatpush.bf16.msra.mxu3 %v818_v23  ;;  %v808_v36 = vld [vmem:[%s1098_s1 + $0x80] sm:$0xff]  ;;  %v18_v38 = vld [vmem:[%s1097_s0 + $0x10] sm:$0xff]  ;;  %v25_v39 = vld [vmem:[%s1097_s0 + $0x48] sm:$0xff]  ;;  %v31_v43 = vpack.c.bf16 %v24_v33, %v17_v32 }
  0x1a   :  { %443 = vmatpush.bf16.msra.mxu0 %v793_v24  ;;  %v816_v37 = vld [vmem:[%s1098_s1 + $0xc0] sm:$0xff]  ;;  %v19_v41 = vld [vmem:[%s1097_s0 + $0x18] sm:$0xff]  ;;  %v26_v42 = vld [vmem:[%s1097_s0 + $0x50] sm:$0xff]  ;;  %v32_v47 = vpack.c.bf16 %v25_v39, %v18_v38 }
  0x1b   :  { %457 = vmatpush.bf16.msra.mxu1 %v801_v25  ;;  %v840_v44 = vld [vmem:[%s1098_s1 + $0x180] sm:$0xff]  ;;  %v830_v45 = vld [vmem:[%s1098_s1 + $0x130] sm:$0xff]  ;;  %v33_v48 = vpack.c.bf16 %v26_v42, %v19_v41  ;;  %v829_v49 = vld [vmem:[%s1098_s1 + $0x128] sm:$0xff] }
  0x1c   :  { %471 = vmatpush.bf16.msra.mxu2 %v809_v26  ;;  %v838_v46 = vld [vmem:[%s1098_s1 + $0x170] sm:$0xff]  ;;  %v837_v50 = vld [vmem:[%s1098_s1 + $0x168] sm:$0xff]  ;;  %v828_v51 = vld [vmem:[%s1098_s1 + $0x120] sm:$0xff] }
  0x1d   :  { %485 = vmatpush.bf16.msra.mxu3 %v817_v27  ;;  %v836_v52 = vld [vmem:[%s1098_s1 + $0x160] sm:$0xff]  ;;  %v827_v53 = vld [vmem:[%s1098_s1 + $0x118] sm:$0xff]  ;;  %v22_v55 = vld [vmem:[%s1097_s0 + $0x30] sm:$0xff] }
  0x1e   :  { %444 = vmatpush.bf16.msra.mxu0 %v792_v28  ;;  %v835_v54 = vld [vmem:[%s1098_s1 + $0x158] sm:$0xff]  ;;  %v29_v56 = vld [vmem:[%s1097_s0 + $0x68] sm:$0xff]  ;;  %v826_v57 = vld [vmem:[%s1098_s1 + $0x110] sm:$0xff] }
  0x1f   :  { %458 = vmatpush.bf16.msra.mxu1 %v800_v29  ;;  %v834_v58 = vld [vmem:[%s1098_s1 + $0x150] sm:$0xff]  ;;  %v36_v59 = vpack.c.bf16 %v29_v56, %v22_v55  ;;  %v825_v60 = vld [vmem:[%s1098_s1 + $0x108] sm:$0xff]  ;;  %v824_v62 = vld [vmem:[%s1098_s1 + $0x100] sm:$0xff] }
  0x20   :  { %472 = vmatpush.bf16.msra.mxu2 %v808_v36  ;;  %v833_v61 = vld [vmem:[%s1098_s1 + $0x148] sm:$0xff]  ;;  %v832_v63 = vld [vmem:[%s1098_s1 + $0x140] sm:$0xff]  ;;  %v27_v1 = vld [vmem:[%s1097_s0 + $0x58] sm:$0xff] }
  0x21   :  { %486 = vmatpush.bf16.msra.mxu3 %v816_v37  ;;  %445 = vmatmul.bf16.vlgmr.msra.gmra.mxu0 %v30_v40  ;;  %v20_v0 = vld [vmem:[%s1097_s0 + $0x20] sm:$0xff]  ;;  %v21_v2 = vld [vmem:[%s1097_s0 + $0x28] sm:$0xff] }
  0x22   :  { %493 = vmatpush.bf16.msrb.mxu0 %v831_v34  ;;  %459 = vmatmul.bf16.vlgmr.msra.gmra.mxu1 %v31_v43  ;;  %v28_v3 = vld [vmem:[%s1097_s0 + $0x60] sm:$0xff]  ;;  %v34_v4 = vpack.c.bf16 %v27_v1, %v20_v0  ;;  %s879_s0 = smov [#allocation2]  }
  0x23   :  { %507 = vmatpush.bf16.msrb.mxu1 %v839_v35  ;;  %473 = vmatmul.bf16.vlgmr.msra.gmra.mxu2 %v32_v47  ;;  %v35_v5 = vpack.c.bf16 %v28_v3, %v21_v2  ;;  %v844_v9 = vld [vmem:[%s1099_s2] ss:$0 sm:$0xff]  ;;  %s579_s2 = sshll.u32 %s879_s0, 4  ;;  %s580_s2 = int_to_ptr.vmem [resolvable:$true] %s579_s2 }
  0x24   :  { %528 = vmatpush.bf16.msrb.mxu2 %v840_v44  ;;  %487 = vmatmul.bf16.vlgmr.msra.gmra.mxu3 %v33_v48 }
  0x26   :  { %494 = vmatpush.bf16.msrb.mxu0 %v830_v45 }
  0x27   :  { %508 = vmatpush.bf16.msrb.mxu1 %v838_v46 }
  0x2a   :  { %495 = vmatpush.bf16.msrb.mxu0 %v829_v49 }
  0x2b   :  { %509 = vmatpush.bf16.msrb.mxu1 %v837_v50 }
  0x2e   :  { %496 = vmatpush.bf16.msrb.mxu0 %v828_v51 }
  0x2f   :  { %510 = vmatpush.bf16.msrb.mxu1 %v836_v52 }
  0x32   :  { %497 = vmatpush.bf16.msrb.mxu0 %v827_v53 }
  0x33   :  { %511 = vmatpush.bf16.msrb.mxu1 %v835_v54  ;;  %789 = vmatmul.msk.bf16.vlgmr.msrb.gmra.mxu2 %vm433_vm0, %v36_v59 }
  0x36   :  { %498 = vmatpush.bf16.msrb.mxu0 %v826_v57 }
  0x37   :  { %512 = vmatpush.bf16.msrb.mxu1 %v834_v58 }
  0x3a   :  { %499 = vmatpush.bf16.msrb.mxu0 %v825_v60 }
  0x3b   :  { %513 = vmatpush.bf16.msrb.mxu1 %v833_v61 }
  0x3e   :  { %500 = vmatpush.bf16.msrb.mxu0 %v824_v62 }
  0x3f   :  { %514 = vmatpush.bf16.msrb.mxu1 %v832_v63 }
  0x41   :  { %501 = vmatmul.bf16.vlgmr.msrb.gmra.mxu0 %v34_v4 }
  0x42   :  { %515 = vmatmul.bf16.vlgmr.msrb.gmra.mxu1 %v35_v5 }
  0x9e   :  { %v446_v6 = vpop.f32.mrf.mxu0 }
  0x9f   :  { %v460_v7 = vpop.f32.mrf.mxu1  ;;  %v447_v10 = vadd.f32 %v844_v9, %v446_v6 }
  0xa1   :  { %v461_v11 = vadd.f32 %v460_v7, %v447_v10 }
  0xa6   :  { %v474_v8 = vpop.f32.mrf.mxu2  ;;  %v448_v12 = vpop.f32.mrf.mxu0 }
  0xa7   :  { %v462_v13 = vpop.f32.mrf.mxu1  ;;  %v488_v15 = vpop.f32.mrf.mxu3  ;;  %v475_v16 = vadd.f32 %v474_v8, %v461_v11  ;;  %v449_v17 = vadd.f32 %v844_v9, %v448_v12 }
  0xa9   :  { %v489_v18 = vadd.f32 %v488_v15, %v475_v16  ;;  %v463_v19 = vadd.f32 %v462_v13, %v449_v17 }
  0xae   :  { %v476_v14 = vpop.f32.mrf.mxu2 }
  0xaf   :  { %v477_v24 = vadd.f32 %v476_v14, %v463_v19  ;;  %v490_v26 = vpop.f32.mrf.mxu3 }
  0xb1   :  { %v491_v28 = vadd.f32 %v490_v26, %v477_v24 }
  0xb6   :  { %v530_v23 = vpop.f32.mrf.mxu2 }
  0xbe   :  { %v502_v20 = vpop.f32.mrf.mxu0  ;;  %v532_v34 = vpop.f32.mrf.mxu2 }
  0xbf   :  { %v516_v21 = vpop.f32.mrf.mxu1  ;;  %v503_v22 = vadd.f32 %v502_v20, %v489_v18 }
  0xc1   :  { %v517_v25 = vadd.f32 %v516_v21, %v503_v22 }
  0xc3   :  { %v531_v27 = vadd.f32 %v530_v23, %v517_v25 }
  0xc5   :  { %v790_v29 = vmul.f32 -1.442695, %v531_v27 }
  0xc6   :  { %v504_v30 = vpop.f32.mrf.mxu0 }
  0xc7   :  { %845 = vpow2.f32 %v790_v29  ;;  %v505_v31 = vadd.f32 %v504_v30, %v491_v28  ;;  %v518_v32 = vpop.f32.mrf.mxu1 }
  0xc9   :  { %v519_v33 = vadd.f32 %v518_v32, %v505_v31 }
  0xcb   :  { %v533_v35 = vadd.f32 %v532_v34, %v519_v33 }
  0xcd   :  { %v846_v36 = vpop.eup %845  ;;  %v791_v37 = vmul.f32 -1.442695, %v533_v35 }
  0xce   :  { %v541_v38 = vadd.f32 1.0, %v846_v36 }
  0xcf   :  { %847 = vpow2.f32 %v791_v37 }
  0xd0   :  { %849 = vrcp.f32 %v541_v38  ;;  %v554_v44 = vand.u32 2147483648, %v541_v38  ;;  %v552_v46 = vand.u32 2147483647, %v541_v38  ;;  %vm548_vm2 = vweird.f32 %v541_v38 }
  0xd2   :  { %v555_v49 = vor.u32 1.1754944e-38, %v554_v44  ;;  %vm553_vm4 = vcmp.eq.f32.partialorder %v552_v46, 8.507059e+37 }
  0xd5   :  { %v848_v39 = vpop.eup %847 }
  0xd6   :  { %v850_v40 = vpop.eup %849  ;;  %v542_v41 = vadd.f32 1.0, %v848_v39 }
  0xd7   :  { %v544_v42 = vmul.f32 %v850_v40, %v541_v38  ;;  %vm549_vm1 = vweird.f32 %v850_v40 }
  0xd8   :  { %851 = vrcp.f32 %v542_v41  ;;  %vm550_vm3 = vmor %vm548_vm2, %vm549_vm1  ;;  %v569_v54 = vand.u32 2147483648, %v542_v41  ;;  %v567_v56 = vand.u32 2147483647, %v542_v41  ;;  %vm563_vm6 = vweird.f32 %v542_v41 }
  0xd9   :  { %v545_v43 = vsub.f32 1.0, %v544_v42 }
  0xda   :  { %v570_v58 = vor.u32 1.1754944e-38, %v569_v54  ;;  %vm568_vm8 = vcmp.eq.f32.partialorder %v567_v56, 8.507059e+37 }
  0xdb   :  { %v546_v45 = vmul.f32 %v850_v40, %v545_v43 }
  0xdd   :  { %v547_v47 = vadd.f32 %v850_v40, %v546_v45 }
  0xde   :  { %v852_v48 = vpop.eup %851 }
  0xdf   :  { %v559_v50 = vmul.f32 %v852_v48, %v542_v41  ;;  %v551_v51 = vsel %vm550_vm3, %v850_v40, %v547_v47  ;;  %vm564_vm5 = vweird.f32 %v852_v48 }
  0xe0   :  { %v556_v52 = vsel %vm553_vm4, %v555_v49, %v551_v51  ;;  %vm565_vm7 = vmor %vm563_vm6, %vm564_vm5 }
  0xe1   :  { %v560_v53 = vsub.f32 1.0, %v559_v50  ;;  %573 = vst [vmem:[#allocation2] sm:$0xff] %v556_v52 }
  0xe3   :  { %v561_v55 = vmul.f32 %v852_v48, %v560_v53 }
  0xe5   :  { %v562_v57 = vadd.f32 %v852_v48, %v561_v55 }
  0xe7   :  { %v566_v59 = vsel %vm565_vm7, %v852_v48, %v562_v57 }
  0xe8   :  { %v571_v60 = vsel %vm568_vm8, %v570_v58, %v566_v59 }
  0xe9   :  { %574 = vst [vmem:[#allocation2 + $0x8] sm:$0xff] %v571_v60 }
  0xea   :  { %587 = dma.vmem_to_hbm [thread:$0]  %s580_s2, 256, %s582_s6, [#allocation3], %s880_s7, %s880_s7, %s881_s8  }
  0xeb   :  { %877 = dma.done.wait [#allocation3], 256  }
  0xec   :  { %878 = vsyncadd [#allocation3], 4294967040 }
  0xed   :  { %592 = vsyncpa [#allocation3], 1 }

</bundles_post_ra>
